<compile_context>
chip_gen: v7x
topology: tpu7x:2x2x1
jax: 0.10.0
libtpu: 0.0.40
codegen_flags: <defaults>
</compile_context>

<pallas_src>
import functools

import jax
import jax.numpy as jnp
from jax.experimental import pallas as pl
from jax.experimental.pallas import tpu as pltpu

LOG_SIG_MAX = 2.0
LOG_SIG_MIN = -20.0

LANE = 128            # TPU lane width; padded feature axes use this.

# Row offsets inside the packed bf16 weight buffer (each block is 128 rows,
# so every slice starts on a bf16 (16,128) tile boundary).
_P_W1 = 0 * LANE
_P_W2 = 1 * LANE
_P_WH = 2 * LANE      # fused head weight [Wm || Ws], zero-padded to 128 cols
_P_ROWS = 3 * LANE    # (384, 128) bf16


def _policy_kernel(x_ref, w_ref, b_ref, out_ref, *, action_dim, state_dim):
    # Activations arrive f32; cast to bf16 only for the MXU operands.
    x = x_ref[...].astype(jnp.bfloat16)                      # (TB, state_dim)

    w1 = w_ref[_P_W1:_P_W1 + state_dim, :]                   # (state_dim, 128) bf16
    w2 = w_ref[_P_W2:_P_W2 + LANE, :]                        # (128, 128) bf16
    wh = w_ref[_P_WH:_P_WH + LANE, :]                        # fused [Wm || Ws] bf16

    biases = b_ref[...]                                      # (8, 128) f32
    b1 = biases[0:1, :]
    b2 = biases[1:2, :]
    bh = biases[2:3, :]

    # bf16 operands, f32 accumulate; bias add / ReLU / clamp in f32.
    h1 = jnp.maximum(
        jnp.dot(x, w1, preferred_element_type=jnp.float32) + b1, 0.0)
    h2 = jnp.maximum(
        jnp.dot(h1.astype(jnp.bfloat16), w2,
                preferred_element_type=jnp.float32) + b2, 0.0)
    head = jnp.dot(h2.astype(jnp.bfloat16), wh,
                   preferred_element_type=jnp.float32) + bh   # (TB, 128) f32

    # Clamp only the log_std lanes [action_dim, 2*action_dim); mean lanes pass.
    lane_idx = jax.lax.broadcasted_iota(jnp.int32, head.shape, dimension=1)
    is_log_std = (lane_idx >= action_dim) & (lane_idx < 2 * action_dim)
    out_ref[...] = jnp.where(
        is_log_std, jnp.clip(head, LOG_SIG_MIN, LOG_SIG_MAX), head)


def _pad2(a, rows, cols):
    a = a.astype(jnp.float32)
    return jnp.pad(a, ((0, rows - a.shape[0]), (0, cols - a.shape[1])))


def _round_up(v, m):
    return ((v + m - 1) // m) * m


def pack_params(params):
    """Pack weights into one (384, 128) bf16 buffer and biases into (8, 128) f32."""
    hidden_dim = params["w1"].shape[1]
    action_dim = params["wm"].shape[1]

    w1p = _pad2(params["w1"], LANE, LANE)
    w2p = _pad2(params["w2"], LANE, LANE)
    wh = jnp.concatenate([params["wm"], params["ws"]], axis=1)   # (H, 2A)
    whp = _pad2(wh, LANE, LANE)
    w_packed = jnp.concatenate([w1p, w2p, whp], axis=0).astype(jnp.bfloat16)

    b_packed = jnp.zeros((8, LANE), jnp.float32)
    b_packed = b_packed.at[0, :hidden_dim].set(params["b1"].reshape(-1))
    b_packed = b_packed.at[1, :hidden_dim].set(params["b2"].reshape(-1))
    b_packed = b_packed.at[2, :action_dim].set(params["bm"].reshape(-1))
    b_packed = b_packed.at[2, action_dim:2 * action_dim].set(
        params["bs"].reshape(-1))
    return w_packed, b_packed


def gaussian_policy_forward(x, params, *, max_batch_tile=2048):
    """GaussianPolicyNet.forward as a Pallas kernel.

    x: (B, state_dim) f32
    params: dict of w1,b1,w2,b2,wm,bm,ws,bs (weights (in,out), biases (1,out))
    returns: (mean, log_std), each (B, action_dim) f32
    """
    B, state_dim = x.shape
    hidden_dim = params["w1"].shape[1]
    action_dim = params["wm"].shape[1]
    if state_dim > LANE or hidden_dim > LANE or 2 * action_dim > LANE:
        raise ValueError("feature dims beyond one 128-lane tile are not "
                         "supported by this single-tile kernel")

    w_packed, b_packed = pack_params(params)     # tiny, VMEM-resident

    # Batch tiling: multiples of 8 sublanes; >=2 roughly-equal tiles whenever
    # B >= 16 so v7x's two TensorCores both get work; cap ~max_batch_tile rows
    # (~1 MB f32 output blocks) to stay near HBM roofline without VMEM bumps.
    b8 = _round_up(B, 8)
    n_tiles = max(2, pl.cdiv(b8, max_batch_tile)) if b8 >= 16 else 1
    tb = _round_up(pl.cdiv(b8, n_tiles), 8)
    b_pad = n_tiles * tb

    x_in = x.astype(jnp.float32)
    if b_pad != B:
        # Pad batch rows only (zero-filled); feature axis keeps its natural dim.
        x_in = jnp.pad(x_in, ((0, b_pad - B), (0, 0)))

    out = pl.pallas_call(
        functools.partial(_policy_kernel,
                          action_dim=action_dim, state_dim=state_dim),
        out_shape=jax.ShapeDtypeStruct((b_pad, LANE), jnp.float32),
        grid=(n_tiles,),
        in_specs=[
            pl.BlockSpec((tb, state_dim), lambda i: (i, 0)),   # batch-tiled acts
            pl.BlockSpec((_P_ROWS, LANE), lambda i: (0, 0)),   # resident weights
            pl.BlockSpec((8, LANE), lambda i: (0, 0)),         # resident biases
        ],
        out_specs=pl.BlockSpec((tb, LANE), lambda i: (i, 0)),
        compiler_params=pltpu.CompilerParams(
            dimension_semantics=("parallel",)),
    )(x_in, w_packed, b_packed)

    # Single slice of the live lanes, then split mean / log_std from that view.
    head = out[:B, :2 * action_dim]
    mean = head[:, :action_dim]
    log_std = head[:, action_dim:]
    return mean, log_std


def xavier_uniform(key, fan_in, fan_out, gain=1.0):
    # Matches torch.nn.init.xavier_uniform_ (gain=1)
    limit = gain * jnp.sqrt(6.0 / (fan_in + fan_out))
    return jax.random.uniform(key, (fan_in, fan_out),
                              minval=-limit, maxval=limit, dtype=jnp.float32)


def init_params(key, state_dim, action_dim, hidden_dim):
    k1, k2, k3, k4 = jax.random.split(key, 4)
    return {
        # weights stored as (in, out); PyTorch stores (out, in) — same math.
        "w1": xavier_uniform(k1, state_dim, hidden_dim),
        "b1": jnp.zeros((1, hidden_dim), jnp.float32),
        "w2": xavier_uniform(k2, hidden_dim, hidden_dim),
        "b2": jnp.zeros((1, hidden_dim), jnp.float32),
        "wm": xavier_uniform(k3, hidden_dim, action_dim),
        "bm": jnp.zeros((1, action_dim), jnp.float32),
        "ws": xavier_uniform(k4, hidden_dim, action_dim),
        "bs": jnp.zeros((1, action_dim), jnp.float32),
    }


if __name__ == "__main__":
    state_dim, action_dim, hidden_dim = 16, 4, 32
    batch = 8

    key = jax.random.PRNGKey(0)
    k_param, k_x = jax.random.split(key)
    params = init_params(k_param, state_dim, action_dim, hidden_dim)
    x = jax.random.normal(k_x, (batch, state_dim), dtype=jnp.float32)

    mean, log_std = gaussian_policy_forward(x, params)
    jax.block_until_ready((mean, log_std))

    # Pure-JAX f32 reference of the same forward pass.
    def reference(xin):
        h1 = jnp.maximum(xin @ params["w1"] + params["b1"], 0.0)
        h2 = jnp.maximum(h1 @ params["w2"] + params["b2"], 0.0)
        m = h2 @ params["wm"] + params["bm"]
        ls = jnp.clip(h2 @ params["ws"] + params["bs"],
                      LOG_SIG_MIN, LOG_SIG_MAX)
        return m, ls

    # bf16 matmul operands (f32 accumulate) -> loosened tolerance vs f32 ref.
    TOL = 5e-2
    mean_ref, log_std_ref = reference(x)
    assert mean.shape == (batch, action_dim)
    assert log_std.shape == (batch, action_dim)
    assert jnp.allclose(mean, mean_ref, atol=TOL, rtol=TOL), "mean mismatch"
    assert jnp.allclose(log_std, log_std_ref, atol=TOL, rtol=TOL), \
        "log_std mismatch"

    # Ragged, multi-tile batch exercises row padding + multi-tile grid path.
    x_big = jax.random.normal(jax.random.PRNGKey(1), (300, state_dim),
                              dtype=jnp.float32)
    mean_b, log_std_b = gaussian_policy_forward(x_big, params,
                                                max_batch_tile=128)
    jax.block_until_ready((mean_b, log_std_b))
    mean_br, log_std_br = reference(x_big)
    assert jnp.allclose(mean_b, mean_br, atol=TOL, rtol=TOL), "mean mismatch"
    assert jnp.allclose(log_std_b, log_std_br, atol=TOL, rtol=TOL), \
        "log_std mismatch"

    # TODO(synk): sample() (rsample / tanh squash / log_prob with action_scale)
    # is a distributional method outside forward(); not implemented here.
    print("KERNEL_OK")
</pallas_src>

<mosaic_0001>
module attributes {stable_mosaic.version = 11 : i64} {
  func.func @_policy_kernel(%arg0: i32, %arg1: memref<8x16xf32, #tpu.memory_space<vmem>>, %arg2: memref<384x128xbf16, #tpu.memory_space<vmem>>, %arg3: memref<8x128xf32, #tpu.memory_space<vmem>>, %arg4: memref<8x128xf32, #tpu.memory_space<vmem>>) attributes {dimension_semantics = [#tpu.dimension_semantics<parallel>], iteration_bounds = array<i64: 1>, scalar_prefetch = 0 : i64, scratch_operands = 0 : i64, tpu.core_type = #tpu.core_type<tc>, window_params = [{transform_indices = @transform_0, window_bounds = array<i64: 8, 16>}, {pipeline_mode = #tpu.pipeline_mode<synchronous>, transform_indices = @transform_1, window_bounds = array<i64: 384, 128>}, {pipeline_mode = #tpu.pipeline_mode<synchronous>, transform_indices = @transform_2, window_bounds = array<i64: 8, 128>}, {transform_indices = @transform_3, window_bounds = array<i64: 8, 128>}]} {
    %c0 = arith.constant 0 : index
    %c0_0 = arith.constant 0 : index
    %0 = vector.load %arg1[%c0, %c0_0] : memref<8x16xf32, #tpu.memory_space<vmem>>, vector<8x16xf32>
    %1 = arith.truncf %0 : vector<8x16xf32> to vector<8x16xbf16>
    %c0_1 = arith.constant 0 : index
    %c0_2 = arith.constant 0 : index
    %2 = vector.load %arg2[%c0_1, %c0_2] : memref<384x128xbf16, #tpu.memory_space<vmem>>, vector<16x128xbf16>
    %c128 = arith.constant 128 : index
    %c0_3 = arith.constant 0 : index
    %3 = vector.load %arg2[%c128, %c0_3] : memref<384x128xbf16, #tpu.memory_space<vmem>>, vector<128x128xbf16>
    %c256 = arith.constant 256 : index
    %c0_4 = arith.constant 0 : index
    %4 = vector.load %arg2[%c256, %c0_4] : memref<384x128xbf16, #tpu.memory_space<vmem>>, vector<128x128xbf16>
    %c0_5 = arith.constant 0 : index
    %c0_6 = arith.constant 0 : index
    %5 = vector.load %arg3[%c0_5, %c0_6] : memref<8x128xf32, #tpu.memory_space<vmem>>, vector<8x128xf32>
    %6 = vector.extract_strided_slice %5 {offsets = [0, 0], sizes = [1, 128], strides = [1, 1]} : vector<8x128xf32> to vector<1x128xf32>
    %7 = vector.extract_strided_slice %5 {offsets = [1, 0], sizes = [1, 128], strides = [1, 1]} : vector<8x128xf32> to vector<1x128xf32>
    %8 = vector.extract_strided_slice %5 {offsets = [2, 0], sizes = [1, 128], strides = [1, 1]} : vector<8x128xf32> to vector<1x128xf32>
    %cst = arith.constant dense<0.000000e+00> : vector<8x128xf32>
    %9 = tpu.matmul %1, %2, %cst {dimension_numbers = #tpu.dot_dimension_numbers<[1], [0], [0], [1], [0, 0, 1, 1], [], []>} : vector<8x16xbf16>, vector<16x128xbf16>, vector<8x128xf32> -> vector<8x128xf32>
    %10 = vector.broadcast %6 : vector<1x128xf32> to vector<8x128xf32>
    %11 = arith.addf %9, %10 : vector<8x128xf32>
    %cst_7 = arith.constant 0.000000e+00 : f32
    %12 = vector.broadcast %cst_7 : f32 to vector<8x128xf32>
    %13 = arith.maximumf %11, %12 : vector<8x128xf32>
    %14 = arith.truncf %13 : vector<8x128xf32> to vector<8x128xbf16>
    %cst_8 = arith.constant dense<0.000000e+00> : vector<8x128xf32>
    %15 = tpu.matmul %14, %3, %cst_8 {dimension_numbers = #tpu.dot_dimension_numbers<[1], [0], [0], [1], [0, 0, 1, 1], [], []>} : vector<8x128xbf16>, vector<128x128xbf16>, vector<8x128xf32> -> vector<8x128xf32>
    %16 = vector.broadcast %7 : vector<1x128xf32> to vector<8x128xf32>
    %17 = arith.addf %15, %16 : vector<8x128xf32>
    %cst_9 = arith.constant 0.000000e+00 : f32
    %18 = vector.broadcast %cst_9 : f32 to vector<8x128xf32>
    %19 = arith.maximumf %17, %18 : vector<8x128xf32>
    %20 = arith.truncf %19 : vector<8x128xf32> to vector<8x128xbf16>
    %cst_10 = arith.constant dense<0.000000e+00> : vector<8x128xf32>
    %21 = tpu.matmul %20, %4, %cst_10 {dimension_numbers = #tpu.dot_dimension_numbers<[1], [0], [0], [1], [0, 0, 1, 1], [], []>} : vector<8x128xbf16>, vector<128x128xbf16>, vector<8x128xf32> -> vector<8x128xf32>
    %22 = vector.broadcast %8 : vector<1x128xf32> to vector<8x128xf32>
    %23 = arith.addf %21, %22 : vector<8x128xf32>
    %24 = tpu.iota {dimensions = array<i32: 1>} : vector<8x128xi32>
    %c4_i32 = arith.constant 4 : i32
    %25 = vector.broadcast %c4_i32 : i32 to vector<8x128xi32>
    %26 = arith.cmpi sge, %24, %25 : vector<8x128xi32>
    %c8_i32 = arith.constant 8 : i32
    %27 = vector.broadcast %c8_i32 : i32 to vector<8x128xi32>
    %28 = arith.cmpi slt, %24, %27 : vector<8x128xi32>
    %29 = arith.andi %26, %28 : vector<8x128xi1>
    %cst_11 = arith.constant -2.000000e+01 : f32
    %cst_12 = arith.constant 2.000000e+00 : f32
    %30 = vector.broadcast %cst_11 : f32 to vector<8x128xf32>
    %31 = arith.maximumf %30, %23 : vector<8x128xf32>
    %32 = vector.broadcast %cst_12 : f32 to vector<8x128xf32>
    %33 = arith.minimumf %32, %31 : vector<8x128xf32>
    %34 = arith.select %29, %33, %23 : vector<8x128xi1>, vector<8x128xf32>
    %c0_13 = arith.constant 0 : index
    %c0_14 = arith.constant 0 : index
    %35 = vector.load %arg4[%c0_13, %c0_14] : memref<8x128xf32, #tpu.memory_space<vmem>>, vector<8x128xf32>
    tpu.vector_store %arg4[%c0_13, %c0_14], %34 {strides = array<i32>} : memref<8x128xf32, #tpu.memory_space<vmem>>, vector<8x128xf32>,
    return
  }
  func.func @transform_0(%arg0: i32) -> (i32, i32) {
    %c0_i32 = arith.constant 0 : i32
    %c0_i32_0 = arith.constant 0 : i32
    return %arg0, %c0_i32 : i32, i32
  }
  func.func @transform_1(%arg0: i32) -> (i32, i32) {
    %c0_i32 = arith.constant 0 : i32
    %c0_i32_0 = arith.constant 0 : i32
    %c0_i32_1 = arith.constant 0 : i32
    return %c0_i32, %c0_i32_0 : i32, i32
  }
  func.func @transform_2(%arg0: i32) -> (i32, i32) {
    %c0_i32 = arith.constant 0 : i32
    %c0_i32_0 = arith.constant 0 : i32
    %c0_i32_1 = arith.constant 0 : i32
    return %c0_i32, %c0_i32_0 : i32, i32
  }
  func.func @transform_3(%arg0: i32) -> (i32, i32) {
    %c0_i32 = arith.constant 0 : i32
    %c0_i32_0 = arith.constant 0 : i32
    return %arg0, %c0_i32 : i32, i32
  }
}

</mosaic_0001>

<bundles_post_ra>
// kernel: tpu_custom_call.1
= control target key start
LH: loop header
LB: loop body
LE: loop exit
PB: predicated region body
PF: predicated region fallthrough
CT: control target
= control target key end

     0   :  { %8 = vsyncpa [#allocation3], 0  ;;  %s656_s0 = inlined_call_operand.hbm [shape: f32[8,16], index: 0, kind: input, shape index: {}]   ;;  %s657_s1 = inlined_call_operand.hbm [shape: bf16[384,128], index: 1, kind: input, shape index: {}]   ;;  %s658_s2 = inlined_call_operand.hbm [shape: f32[8,128], index: 2, kind: input, shape index: {}]   ;;  %s659_s3 = inlined_call_operand.hbm [shape: f32[8,128], index: 3, kind: output, shape index: {}]  }
   0x1   :  { %9 = vsyncpa [#allocation6], 0 }
   0x2   :  { %10 = vsyncpa [#allocation4], 0  ;;  %s560_s12 = smov [#allocation5]   ;;  %s466_s16 = scalar_lea.hbm %s657_s1, 3072 }
   0x3   :  { %s26_s13 = sshll.u32 %s560_s12, 4  ;;  %p467_p0 = scmp.ne.s32.totalorder %s657_s1, %s466_s16  ;;  %s27_s13 = int_to_ptr.vmem [resolvable:$true] %s26_s13 }
   0x4   :  { %p470_p1 = scmp.lt.u32.totalorder %s466_s16, %s657_s1 }
   0x6   :  { %p472_p2 = pnand %p470_p1, %p467_p0 }
   0x8   :  { %475 = shalt.err (!%p472_p2)
}
   0x9   :  { %s476_s21 = scalar_lea.vmem %s27_s13, 3072  ;;  %p481_p4 = scmp.lt.s32.totalorder %s27_s13, %s27_s13 }
   0xa   :  { %p477_p3 = scmp.ne.s32.totalorder %s27_s13, %s476_s21  ;;  %p482_p5 = scmp.lt.s32.totalorder %s476_s21, %s476_s21 }
   0xc   :  { %p483_p6 = por %p482_p5, %p481_p4 }
   0xe   :  { %p484_p7 = pnand %p483_p6, %p477_p3 }
  0x10   :  { %487 = shalt.err (!%p484_p7)
}
  0x11   :  { %s561_s22 = smov 64   ;;  %s562_s23 = smov 4  }
  0x12   :  { %32 = dma.hbm_to_vmem [thread:$0]  %s657_s1, 3072, %s27_s13, [#allocation6], %s561_s22, %s561_s22, %s562_s23  }
  0x13   :  { %s563_s26 = smov [#allocation2]   ;;  %s564_s28 = smov [#allocation7]  }
  0x14   :  { %s17_s27 = sshll.u32 %s563_s26, 4  ;;  %s39_s29 = sshll.u32 %s564_s28, 4  ;;  %s18_s27 = int_to_ptr.vmem [resolvable:$true] %s17_s27  ;;  %s40_s29 = int_to_ptr.vmem [resolvable:$true] %s39_s29 }
  0x15   :  { %s488_s5 = scalar_lea.hbm %s656_s0, 128 }
  0x16   :  { %p489_p8 = scmp.ne.s32.totalorder %s656_s0, %s488_s5  ;;  %p492_p9 = scmp.lt.u32.totalorder %s488_s5, %s656_s0 }
  0x18   :  { %p494_p10 = pnand %p492_p9, %p489_p8 }
  0x1a   :  { %497 = shalt.err (!%p494_p10)
}
  0x1b   :  { %s498_s1 = scalar_lea.vmem %s18_s27, 128  ;;  %p503_p12 = scmp.lt.s32.totalorder %s18_s27, %s18_s27 }
  0x1c   :  { %p499_p11 = scmp.ne.s32.totalorder %s18_s27, %s498_s1  ;;  %p504_p13 = scmp.lt.s32.totalorder %s498_s1, %s498_s1 }
  0x1e   :  { %p505_p0 = por %p504_p13, %p503_p12 }
  0x20   :  { %p506_p1 = pnand %p505_p0, %p499_p11 }
  0x22   :  { %509 = shalt.err (!%p506_p1)
}
  0x23   :  { %20 = dma.hbm_to_vmem [thread:$0]  %s656_s0, 128, %s18_s27, [#allocation3]  }
  0x24   :  { %s510_s14 = scalar_lea.hbm %s658_s2, 128 }
  0x25   :  { %p511_p2 = scmp.ne.s32.totalorder %s658_s2, %s510_s14  ;;  %p514_p3 = scmp.lt.u32.totalorder %s510_s14, %s658_s2 }
  0x27   :  { %p516_p4 = pnand %p514_p3, %p511_p2 }
  0x29   :  { %519 = shalt.err (!%p516_p4)
}
  0x2a   :  { %s520_s19 = scalar_lea.vmem %s40_s29, 128  ;;  %p525_p6 = scmp.lt.s32.totalorder %s40_s29, %s40_s29 }
  0x2b   :  { %p521_p5 = scmp.ne.s32.totalorder %s40_s29, %s520_s19  ;;  %p526_p7 = scmp.lt.s32.totalorder %s520_s19, %s520_s19 }
  0x2d   :  { %p527_p8 = por %p526_p7, %p525_p6 }
  0x2f   :  { %p528_p9 = pnand %p527_p8, %p521_p5 }
  0x31   :  { %531 = shalt.err (!%p528_p9)
}
  0x32   :  { %42 = dma.hbm_to_vmem [thread:$0]  %s658_s2, 128, %s40_s29, [#allocation6]  }
  0x33   :  { %554 = dma.done.wait [#allocation3], 128  }
  0x34   :  { %555 = vsyncadd [#allocation3], 4294967168 }
  0x35   :  { %556 = dma.done.wait [#allocation6], 3200  }
  0x36   :  { %557 = vsyncadd [#allocation6], 4294964096  ;;  %v565_v0 = vmov 0.0   ;;  %vm566_vm0 = vmmov 0   ;;  %v449_v1 = vld [vmem:[#allocation5] sm:$0xff]   ;;  %v53_v2 = vld [vmem:[#allocation2] sm:$0xff]  ;;  %v90_v18 = vlaneseq }
  0x37   :  { %395 = vmatprep.subr.bf16.mxu0 %v565_v0  ;;  %397 = vmatprep.mubr.msk.bf16.mxu0 %vm566_vm0, %v565_v0  ;;  %v54_v3 = vpack.c.bf16 %v53_v2, %v53_v2  ;;  %vm100_vm1 = vcmask 130048   ;;  %v450_v4 = vld [vmem:[#allocation5 + $0x40] sm:$0xff]   ;;  %v451_v5 = vld [vmem:[#allocation5 + $0x48] sm:$0xff]   ;;  %v452_v6 = vld [vmem:[#allocation5 + $0x50] sm:$0xff]   ;;  %s567_s2 = smov [#allocation8]  }
  0x38   :  { %401 = vmatprep.subr.bf16.mxu1 %v565_v0  ;;  %417 = vmatprep.mubr.msk.bf16.mxu1 %vm566_vm0, %v565_v0  ;;  %v453_v7 = vld [vmem:[#allocation5 + $0x58] sm:$0xff]   ;;  %v454_v8 = vld [vmem:[#allocation5 + $0x60] sm:$0xff]   ;;  %v455_v9 = vld [vmem:[#allocation5 + $0x68] sm:$0xff]   ;;  %v91_v19 = vshrl.u32 %v90_v18, 7  ;;  %v333_v43 = vand.u32 127, %v90_v18  ;;  %s347_s21 = sshll.u32 %s567_s2, 4  ;;  %s348_s21 = int_to_ptr.vmem [resolvable:$true] %s347_s21 }
  0x39   :  { %396 = vmatpush3.bf16.msra.mxu0 %v449_v1  ;;  %402 = vmatpush3.bf16.msra.mxu1 %v450_v4  ;;  %v456_v10 = vld [vmem:[#allocation5 + $0x70] sm:$0xff]   ;;  %v457_v11 = vld [vmem:[#allocation5 + $0x78] sm:$0xff]   ;;  %v458_v12 = vld [vmem:[#allocation5 + $0x80] sm:$0xff]   ;;  %s532_s22 = scalar_lea.vmem %s348_s21, 128  ;;  %p537_p11 = scmp.lt.s32.totalorder %s348_s21, %s348_s21 }
  0x3a   :  { %421 = vmatprep.subr.bf16.mxu0 %v565_v0  ;;  %403 = vmatprep.subr.bf16.mxu1 %v565_v0  ;;  %v459_v13 = vld [vmem:[#allocation5 + $0x88] sm:$0xff]   ;;  %v460_v14 = vld [vmem:[#allocation5 + $0x90] sm:$0xff]   ;;  %v461_v15 = vld [vmem:[#allocation5 + $0x98] sm:$0xff]   ;;  %v92_v20 = vsub.s32 0, %v91_v19  ;;  %v148_v32 = vsub.s32 1, %v91_v19  ;;  %v242_v41 = vsub.s32 2, %v91_v19  ;;  %p533_p10 = scmp.ne.s32.totalorder %s348_s21, %s532_s22  ;;  %p538_p12 = scmp.lt.s32.totalorder %s532_s22, %s532_s22 }
  0x3b   :  { %v462_v16 = vld [vmem:[#allocation5 + $0xa0] sm:$0xff]   ;;  %v463_v17 = vld [vmem:[#allocation5 + $0xa8] sm:$0xff]   ;;  %v464_v30 = vld [vmem:[#allocation5 + $0xb0] sm:$0xff]   ;;  %vm334_vm2 = vcmp.ge.s32.totalorder %v333_v43, 4  ;;  %vm335_vm3 = vcmp.lt.s32.totalorder %v333_v43, 8 }
  0x3c   :  { %398 = vmatmul.mubr.msk.bf16.vlgmr.msra.gmra.mrb[0].mxu0 %vm100_vm1, %v54_v3  ;;  %v89_v21 = vld [vmem:[#allocation7] sm:$0xff]  ;;  %v465_v31 = vld [vmem:[#allocation5 + $0xb8] sm:$0xff]   ;;  %vm336_vm4 = vmand %vm334_vm2, %vm335_vm3  ;;  %p539_p13 = por %p538_p12, %p537_p11 }
  0x3d   :  { %437 = vmatprep.mubr.msk.bf16.mxu0 %vm566_vm0, %v565_v0  ;;  %404 = vmatpush3.bf16.msra.mxu1 %v451_v5  ;;  %v93_v22 = vrot.slane %v89_v21, %v92_v20  ;;  %v149_v33 = vrot.slane %v89_v21, %v148_v32  ;;  %v243_v42 = vrot.slane %v89_v21, %v242_v41 }
  0x3e   :  { %405 = vmatprep.subr.bf16.mxu1 %v565_v0  ;;  %422 = vmatpush3.bf16.msra.mxu0 %v458_v12  ;;  %p540_p0 = pnand %p539_p13, %p533_p10 }
  0x3f   :  { %423 = vmatprep.subr.bf16.mxu0 %v565_v0 }
  0x41   :  { %406 = vmatpush3.bf16.msra.mxu1 %v452_v6 }
  0x42   :  { %407 = vmatprep.subr.bf16.mxu1 %v565_v0  ;;  %424 = vmatpush3.bf16.msra.mxu0 %v459_v13 }
  0x43   :  { %425 = vmatprep.subr.bf16.mxu0 %v565_v0 }
  0x45   :  { %408 = vmatpush3.bf16.msra.mxu1 %v453_v7 }
  0x46   :  { %409 = vmatprep.subr.bf16.mxu1 %v565_v0  ;;  %426 = vmatpush3.bf16.msra.mxu0 %v460_v14 }
  0x47   :  { %427 = vmatprep.subr.bf16.mxu0 %v565_v0 }
  0x49   :  { %410 = vmatpush3.bf16.msra.mxu1 %v454_v8 }
  0x4a   :  { %411 = vmatprep.subr.bf16.mxu1 %v565_v0  ;;  %428 = vmatpush3.bf16.msra.mxu0 %v461_v15 }
  0x4b   :  { %429 = vmatprep.subr.bf16.mxu0 %v565_v0 }
  0x4d   :  { %412 = vmatpush3.bf16.msra.mxu1 %v455_v9 }
  0x4e   :  { %413 = vmatprep.subr.bf16.mxu1 %v565_v0  ;;  %430 = vmatpush3.bf16.msra.mxu0 %v462_v16 }
  0x4f   :  { %431 = vmatprep.subr.bf16.mxu0 %v565_v0 }
  0x51   :  { %414 = vmatpush3.bf16.msra.mxu1 %v456_v10 }
  0x52   :  { %415 = vmatprep.subr.bf16.mxu1 %v565_v0  ;;  %432 = vmatpush3.bf16.msra.mxu0 %v463_v17 }
  0x53   :  { %433 = vmatprep.subr.bf16.mxu0 %v565_v0 }
  0x55   :  { %416 = vmatpush3.bf16.msra.mxu1 %v457_v11 }
  0x56   :  { %434 = vmatpush3.bf16.msra.mxu0 %v464_v30 }
  0x57   :  { %435 = vmatprep.subr.bf16.mxu0 %v565_v0 }
  0x5a   :  { %436 = vmatpush3.bf16.msra.mxu0 %v465_v31 }
 0x10f   :  { %v138_v23 = vpop.f32.mrb[0].mxu0 }
 0x110   :  { %v139_v24 = vadd.f32 %v138_v23, %v93_v22  ;;  %v399_v25 = vpop.f32.mrb[1].mxu0 }
 0x111   :  { %v141_v26 = vpop.f32.mrb[2].mxu0 }
 0x112   :  { %v144_v27 = vmax.f32 %v139_v24, 0.0  ;;  %v400_v28 = vpop.f32.mrb[3].mxu0 }
 0x114   :  { %v145_v29 = vpack.c.bf16 %v144_v27, %v144_v27 }
 0x116   :  { %418 = vmatmul.mubr.bf16.vlgmr.msra.gmra.mrb[0].mxu1 %v145_v29 }
 0x1e9   :  { %v232_v34 = vpop.f32.mrb[0].mxu1 }
 0x1ea   :  { %v233_v35 = vadd.f32 %v232_v34, %v149_v33  ;;  %v419_v36 = vpop.f32.mrb[1].mxu1 }
 0x1eb   :  { %v235_v37 = vpop.f32.mrb[2].mxu1 }
 0x1ec   :  { %v238_v38 = vmax.f32 %v233_v35, 0.0  ;;  %v420_v39 = vpop.f32.mrb[3].mxu1 }
 0x1ee   :  { %v239_v40 = vpack.c.bf16 %v238_v38, %v238_v38 }
 0x1f0   :  { %438 = vmatmul.mubr.bf16.vlgmr.msra.gmra.mrb[4].mxu0 %v239_v40 }
 0x2c3   :  { %v326_v44 = vpop.f32.mrb[4].mxu0 }
 0x2c4   :  { %v327_v45 = vadd.f32 %v326_v44, %v243_v42  ;;  %v439_v46 = vpop.f32.mrb[5].mxu0 }
 0x2c5   :  { %v329_v47 = vpop.f32.mrb[6].mxu0 }
 0x2c6   :  { %v337_v48 = vmax.f32 %v327_v45, -20.0  ;;  %v440_v49 = vpop.f32.mrb[7].mxu0 }
 0x2c8   :  { %v338_v50 = vmin.f32 %v337_v48, 2.0 }
 0x2ca   :  { %v339_v51 = vsel %vm336_vm4, %v338_v50, %v327_v45 }
 0x2cb   :  { %340 = vst [vmem:[#allocation8] sm:$0xff] %v339_v51 }
 0x2cc   :  { %543 = shalt.err (!%p540_p0)
}
 0x2cd   :  { %s544_s25 = scalar_lea.hbm %s659_s3, 128 }
 0x2ce   :  { %p545_p1 = scmp.ne.s32.totalorder %s659_s3, %s544_s25  ;;  %p548_p2 = scmp.lt.u32.totalorder %s544_s25, %s659_s3 }
 0x2d0   :  { %p550_p3 = pnand %p548_p2, %p545_p1 }
 0x2d2   :  { %553 = shalt.err (!%p550_p3)
}
 0x2d3   :  { %350 = dma.vmem_to_hbm [thread:$0]  %s348_s21, 128, %s659_s3, [#allocation4]  }
 0x2d4   :  { %558 = dma.done.wait [#allocation4], 128  }
 0x2d5   :  { %559 = vsyncadd [#allocation4], 4294967168 }
 0x2d6   :  { %354 = vsyncpa [#allocation3], 1 }
 0x2d7   :  { %355 = vsyncpa [#allocation6], 1 }
 0x2d8   :  { %356 = vsyncpa [#allocation4], 1 }

</bundles_post_ra>
